<compile_context>
chip_gen: v5e
topology: v5e:2x2
jax: 0.10.0
libtpu: 0.0.40
codegen_flags: <defaults>
</compile_context>

<pallas_src>
from functools import partial

import numpy as np
import jax
import jax.numpy as jnp
from jax.experimental import pallas as pl
from jax.experimental.pallas import tpu as pltpu


# Conservative scoped-VMEM budget: fits v7x's 64 MiB/TC with headroom.
# On v5e/v6e (128 MiB physical) this could be raised (e.g. 96 MiB) and tiles
# grown further.
_VMEM_LIMIT = 48 * 1024 * 1024


def _pick_tile(dim, candidates):
    """Largest candidate that evenly divides `dim`; falls back to the full dim
    (a full-extent block is always a legal BlockSpec).  Callers must run the
    chosen tiles through _check_vmem so an awkward dimension raises instead of
    silently blowing past the VMEM limit."""
    for c in candidates:
        if c <= dim and dim % c == 0:
            return c
    return dim


def _check_vmem(est_bytes, what):
    if est_bytes > _VMEM_LIMIT:
        raise ValueError(
            f"{what}: estimated VMEM working set {est_bytes / 2**20:.1f} MiB exceeds "
            f"vmem_limit_bytes={_VMEM_LIMIT / 2**20:.0f} MiB -- a dimension probably "
            f"fell back to a full-extent block; use smaller tiles or pad the input.")


def _pad128(n):
    return ((n + 127) // 128) * 128


# ----------------- Tiled, pipelined matmul kernels (bf16 MXU, f32 acc) -----------------
def _matmul_kernel(x_ref, w_ref, o_ref, acc_ref):
    @pl.when(pl.program_id(2) == 0)
    def _():
        acc_ref[...] = jnp.zeros_like(acc_ref)

    acc_ref[...] += jnp.dot(x_ref[...], w_ref[...], preferred_element_type=jnp.float32)

    @pl.when(pl.program_id(2) == pl.num_programs(2) - 1)
    def _():
        o_ref[...] = acc_ref[...].astype(o_ref.dtype)


def _matmul_bias_kernel(x_ref, w_ref, b_ref, o_ref, acc_ref):
    @pl.when(pl.program_id(2) == 0)
    def _():
        acc_ref[...] = jnp.zeros_like(acc_ref)

    acc_ref[...] += jnp.dot(x_ref[...], w_ref[...], preferred_element_type=jnp.float32)

    @pl.when(pl.program_id(2) == pl.num_programs(2) - 1)
    def _():
        o_ref[...] = (acc_ref[...] + b_ref[...]).astype(o_ref.dtype)


def _matmul_qknorm_kernel(x_ref, w_ref, scl_ref, pas_ref, avg_ref, exp_ref, o_ref,
                          acc_ref, *, eps):
    """QKV projection with per-head RMSNorm of the Q/K columns fused into the
    finalize step (K grid axis last, 'arbitrary').

    Per output column d of the (tm, tn) tile:
      Q cols : y * rsqrt(mean_head(y^2)+eps) * q_norm_w[d%dh] / sqrt(dh)
      K cols : y * rsqrt(mean_head(y^2)+eps) * k_norm_w[d%dh]
      V cols : y                                         (scl=0, pas=1)
    mean_head(y^2) is computed with two small matmuls against a block-diagonal
    averaging matrix (avg_ref: (tn, tn//dh)) and its 0/1 expansion
    (exp_ref: (tn//dh, tn)) -- no lane-split reshape, no per-head loop.
    """
    @pl.when(pl.program_id(2) == 0)
    def _():
        acc_ref[...] = jnp.zeros_like(acc_ref)

    acc_ref[...] += jnp.dot(x_ref[...], w_ref[...], preferred_element_type=jnp.float32)

    @pl.when(pl.program_id(2) == pl.num_programs(2) - 1)
    def _():
        y = acc_ref[...]                                                       # (tm, tn) f32
        ms = jnp.dot(y * y, avg_ref[...], preferred_element_type=jnp.float32)  # (tm, tn//dh)
        inv = jax.lax.rsqrt(ms + eps)                                          # per-head 1/rms
        inv_e = jnp.dot(inv, exp_ref[...], preferred_element_type=jnp.float32)  # (tm, tn)
        o_ref[...] = (y * (inv_e * scl_ref[...] + pas_ref[...])).astype(o_ref.dtype)


def _matmul_tiles(M, N, K, *, tn_multiple=1):
    tm = _pick_tile(M, (512, 256, 128, 64, 32, 16, 8))
    tn_cands = tuple(c for c in (1024, 768, 512, 384, 256, 128) if c % tn_multiple == 0)
    tn = _pick_tile(N, tn_cands)
    tk = _pick_tile(K, (1024, 512, 256, 128))
    return tm, tn, tk


def _matmul_compiler_params():
    # NOTE: if DMA ever peeks out at these tile sizes (v5e's lower HBM BW),
    # deepen pipelining with pipeline_mode=pl.Buffered(3) on the streaming specs
    # instead of shrinking the tiles.
    return pltpu.CompilerParams(
        dimension_semantics=("parallel", "parallel", "arbitrary"),
        vmem_limit_bytes=_VMEM_LIMIT,
    )


def pallas_linear(x2d, w, b=None, *, out_dtype=None):
    """out = x2d @ w (+ b).  Operands are fed to the MXU in bf16; accumulation
    is f32 in a VMEM scratch tile; bias added at finalize in f32."""
    M, K = x2d.shape
    K2, N = w.shape
    assert K == K2
    out_dtype = out_dtype or x2d.dtype
    xb = x2d.astype(jnp.bfloat16)
    wb = w.astype(jnp.bfloat16)
    tm, tn, tk = _matmul_tiles(M, N, K)
    est = (2 * (tm * tk + tk * tn) * 2 + 2 * tm * tn * jnp.dtype(out_dtype).itemsize
           + tm * tn * 4 + 2 * tn * 4)
    _check_vmem(est, "pallas_linear")
    grid = (M // tm, N // tn, K // tk)
    x_spec = pl.BlockSpec((tm, tk), lambda i, j, k: (i, k))
    w_spec = pl.BlockSpec((tk, tn), lambda i, j, k: (k, j))
    o_spec = pl.BlockSpec((tm, tn), lambda i, j, k: (i, j))
    scratch = [pltpu.VMEM((tm, tn), jnp.float32)]

    if b is None:
        return pl.pallas_call(
            _matmul_kernel,
            out_shape=jax.ShapeDtypeStruct((M, N), out_dtype),
            grid=grid,
            in_specs=[x_spec, w_spec],
            out_specs=o_spec,
            scratch_shapes=scratch,
            compiler_params=_matmul_compiler_params(),
        )(xb, wb)

    b2d = b.reshape(1, N).astype(jnp.float32)
    b_spec = pl.BlockSpec((1, tn), lambda i, j, k: (0, j))
    return pl.pallas_call(
        _matmul_bias_kernel,
        out_shape=jax.ShapeDtypeStruct((M, N), out_dtype),
        grid=grid,
        in_specs=[x_spec, w_spec, b_spec],
        out_specs=o_spec,
        scratch_shapes=scratch,
        compiler_params=_matmul_compiler_params(),
    )(xb, wb, b2d)


def pallas_qkv_norm_linear(x2d, w_qkv, scale_vec, pass_vec, head_dim, eps,
                           *, out_dtype=jnp.bfloat16):
    """qkv = x2d @ w_qkv with per-head RMSNorm of the Q/K thirds (and the
    1/sqrt(dh) softmax scale folded into the Q columns) fused into the matmul
    epilogue.  Output is bf16, ready to be streamed into the attention kernel."""
    M, K = x2d.shape
    K2, N = w_qkv.shape
    assert K == K2 and N % head_dim == 0
    xb = x2d.astype(jnp.bfloat16)
    wb = w_qkv.astype(jnp.bfloat16)
    tm, tn, tk = _matmul_tiles(M, N, K, tn_multiple=head_dim)
    assert tn % head_dim == 0, "column tiles must be head-aligned for the fused RMSNorm"
    hb = tn // head_dim
    est = (2 * (tm * tk + tk * tn) * 2 + 2 * tm * tn * jnp.dtype(out_dtype).itemsize
           + tm * tn * 4 + 4 * tn * 4 + 2 * tn * hb * 4)
    _check_vmem(est, "pallas_qkv_norm_linear")

    # Block-diagonal per-head averaging / expansion matrices; the head grouping
    # pattern repeats every head_dim columns, so one (tn, hb) / (hb, tn) pair
    # serves every head-aligned column tile.
    col = np.arange(tn) // head_dim
    avg = jnp.asarray((col[:, None] == np.arange(hb)[None, :]).astype(np.float32)
                      / head_dim)                                              # (tn, hb)
    expm = jnp.asarray((np.arange(hb)[:, None] == col[None, :]).astype(np.float32))  # (hb, tn)

    grid = (M // tm, N // tn, K // tk)
    return pl.pallas_call(
        partial(_matmul_qknorm_kernel, eps=eps),
        out_shape=jax.ShapeDtypeStruct((M, N), out_dtype),
        grid=grid,
        in_specs=[
            pl.BlockSpec((tm, tk), lambda i, j, k: (i, k)),
            pl.BlockSpec((tk, tn), lambda i, j, k: (k, j)),
            pl.BlockSpec((1, tn), lambda i, j, k: (0, j)),   # scale: q_w/sqrt(dh) | k_w | 0
            pl.BlockSpec((1, tn), lambda i, j, k: (0, j)),   # passthrough: 0 | 0 | 1
            pl.BlockSpec((tn, hb), lambda i, j, k: (0, 0)),
            pl.BlockSpec((hb, tn), lambda i, j, k: (0, 0)),
        ],
        out_specs=pl.BlockSpec((tm, tn), lambda i, j, k: (i, j)),
        scratch_shapes=[pltpu.VMEM((tm, tn), jnp.float32)],
        compiler_params=_matmul_compiler_params(),
    )(xb, wb, scale_vec.astype(jnp.float32), pass_vec.astype(jnp.float32), avg, expm)


# ---------- Flash attention over pre-normalized Q/K (online softmax over kv axis) ----------
def _flash_attn_kernel(q_ref, k_ref, v_ref, o_ref, q3_sc, m_sc, l_sc, acc_sc, *, nh, dh):
    ki = pl.program_id(2)

    # Per-(batch, q-tile) init: split the pre-normalized q tile into heads ONCE
    # and cache it (bf16) for all kv steps; reset the online-softmax state.
    @pl.when(ki == 0)
    def _():
        q = q_ref[0]                                                      # (tq, D) bf16
        q3_sc[...] = jnp.stack([q[:, h * dh:(h + 1) * dh] for h in range(nh)], axis=0)
        m_sc[...] = jnp.full_like(m_sc, -jnp.inf)
        l_sc[...] = jnp.zeros_like(l_sc)
        acc_sc[...] = jnp.zeros_like(acc_sc)

    # One kv step: batched per-head scores + online-softmax update (no norm work
    # here -- K/Q were RMSNorm'd and scaled in the QKV matmul epilogue).
    k = k_ref[0]                                                          # (tk, D) bf16
    v = v_ref[0]                                                          # (tk, D) bf16
    k3 = jnp.stack([k[:, h * dh:(h + 1) * dh] for h in range(nh)], axis=0)   # (nh, tk, dh)
    v3 = jnp.stack([v[:, h * dh:(h + 1) * dh] for h in range(nh)], axis=0)   # (nh, tk, dh)

    s = jnp.einsum("hqd,hkd->hqk", q3_sc[...], k3,
                   preferred_element_type=jnp.float32)                    # (nh, tq, tk) f32

    m_prev = m_sc[...]
    m_new = jnp.maximum(m_prev, jnp.max(s, axis=-1, keepdims=True))
    alpha = jnp.exp(m_prev - m_new)
    p = jnp.exp(s - m_new)          # f32 exp: safe on v5e (no bf16 EUP); bf16 only for MXU
    l_sc[...] = alpha * l_sc[...] + jnp.sum(p, axis=-1, keepdims=True)
    acc_sc[...] = alpha * acc_sc[...] + jnp.einsum(
        "hqk,hkd->hqd", p.astype(v3.dtype), v3, preferred_element_type=jnp.float32)
    m_sc[...] = m_new

    # Finalize: normalize and merge heads back into one lane-dense (tq, D) store.
    @pl.when(ki == pl.num_programs(2) - 1)
    def _():
        inv_l = pl.reciprocal(l_sc[...], approx=True)   # EUP; ~1e-4 rel err, finalize-only
        o = acc_sc[...] * inv_l                                           # (nh, tq, dh) f32
        o_ref[0] = jnp.concatenate([o[h] for h in range(nh)], axis=-1).astype(o_ref.dtype)


# ------------------------------------- Module forward -------------------------------------
def qk_norm_self_attention(x, params, head_dim, eps=1e-5, *, tq=None, tk=None):
    """Forward pass of QK_Norm_SelfAttention in eval mode (dropout = identity,
    attn_bias / score_mod = None, use_qk_norm=True, qkv_bias=False, fc_bias=True)."""
    B, L, D = x.shape
    assert D % head_dim == 0
    nh = D // head_dim
    dh = head_dim
    # Lane-dense path: D must be a multiple of 128 so the fused qkv column
    # blocks and the merged-head output stores stay lane-dense.
    assert D % 128 == 0, "dim must be a multiple of 128 for the lane-dense path"
    # TODO(synk): dims not a multiple of 128 / ragged L need padded + masked tiles.

    # Fold the RMSNorm weights (and the 1/sqrt(dh) softmax scale for Q) into a
    # per-column multiplier; V columns pass through untouched.
    sm_scale = 1.0 / (float(dh) ** 0.5)
    qw = params["q_norm_w"].astype(jnp.float32)
    kw = params["k_norm_w"].astype(jnp.float32)
    scale_vec = jnp.concatenate(
        [jnp.tile(qw * sm_scale, nh), jnp.tile(kw, nh), jnp.zeros((D,), jnp.float32)]
    ).reshape(1, 3 * D)
    pass_vec = jnp.concatenate(
        [jnp.zeros((2 * D,), jnp.float32), jnp.ones((D,), jnp.float32)]
    ).reshape(1, 3 * D)

    # QKV projection with fused per-head RMSNorm on Q/K -> (B, L, 3D) bf16.
    # TODO(synk): qkv_bias=True would need the bias added before the fused norm.
    qkv_n = pallas_qkv_norm_linear(
        x.reshape(B * L, D), params["w_qkv"], scale_vec, pass_vec, dh, eps
    ).reshape(B, L, 3 * D)

    # Attention tile sizes.  When auto-picking, keep >= 2 parallel grid
    # iterations so both v7x TensorCores get work.
    if tq is None:
        cands = [c for c in (256, 128, 64, 32, 16, 8) if L % c == 0]
        tq = next((c for c in cands if B * (L // c) >= 2), cands[-1] if cands else L)
    if tk is None:
        tk = _pick_tile(L, (512, 256, 128, 64, 32, 16, 8))
    assert L % tq == 0 and L % tk == 0

    dh_pad = _pad128(dh)
    est = (2 * tq * D * 2 + 2 * 2 * tk * D * 2 + 2 * tq * D * 2
           + nh * tq * dh_pad * (2 + 4) + 2 * nh * tq * 128 * 4)
    _check_vmem(est, "flash attention")

    kernel = partial(_flash_attn_kernel, nh=nh, dh=dh)
    attn = pl.pallas_call(
        kernel,
        out_shape=jax.ShapeDtypeStruct((B, L, D), jnp.bfloat16),
        grid=(B, L // tq, L // tk),
        in_specs=[
            # Q / K / V are column blocks 0 / 1 / 2 of the fused (B, L, 3D) tensor.
            pl.BlockSpec((1, tq, D), lambda b, qi, ki: (b, qi, 0)),
            pl.BlockSpec((1, tk, D), lambda b, qi, ki: (b, ki, 1)),
            pl.BlockSpec((1, tk, D), lambda b, qi, ki: (b, ki, 2)),
        ],
        out_specs=pl.BlockSpec((1, tq, D), lambda b, qi, ki: (b, qi, 0)),
        scratch_shapes=[
            pltpu.VMEM((nh, tq, dh), jnp.bfloat16),   # cached head-split normalized q
            pltpu.VMEM((nh, tq, 1), jnp.float32),     # running max
            pltpu.VMEM((nh, tq, 1), jnp.float32),     # running sum
            pltpu.VMEM((nh, tq, dh), jnp.float32),    # output accumulator
        ],
        compiler_params=pltpu.CompilerParams(
            dimension_semantics=("parallel", "parallel", "arbitrary"),
            vmem_limit_bytes=_VMEM_LIMIT,
        ),
    )(qkv_n, qkv_n, qkv_n)

    # Output projection (+ bias); attention output is already merged-head (B, L, D).
    out = pallas_linear(attn.reshape(B * L, D), params["w_fc"], params["b_fc"],
                        out_dtype=x.dtype)
    # TODO(synk): attn_dropout / fc_dropout are identity in eval mode; not implemented.
    return out.reshape(B, L, D)


# ------------------------------------ Pure-JAX reference -----------------------------------
def reference_forward(x, params, head_dim, eps=1e-5):
    """Full-f32 reference of the PyTorch module forward."""
    B, L, D = x.shape
    nh = D // head_dim
    qkv = x.reshape(B * L, D) @ params["w_qkv"]
    qkv = qkv.reshape(B, L, 3 * D)
    q, k, v = jnp.split(qkv, 3, axis=-1)
    q, k, v = (t.reshape(B, L, nh, head_dim) for t in (q, k, v))

    def rms(t, w):
        ms = jnp.mean(jnp.square(t.astype(jnp.float32)), axis=-1, keepdims=True)
        return (t * jax.lax.rsqrt(ms + eps)) * w

    q = rms(q, params["q_norm_w"])
    k = rms(k, params["k_norm_w"])
    scale = 1.0 / jnp.sqrt(jnp.float32(head_dim))
    s = jnp.einsum("blhd,bmhd->bhlm", q, k) * scale
    p = jax.nn.softmax(s, axis=-1)
    o = jnp.einsum("bhlm,bmhd->blhd", p, v).reshape(B * L, D)
    o = o @ params["w_fc"] + params["b_fc"]
    return o.reshape(B, L, D)


# ------------------------------------------- Main ------------------------------------------
if __name__ == "__main__":
    # Small but layout-representative shapes: dim multiple of 128, 4 heads of 32.
    B, L, dim, head_dim = 2, 16, 128, 32
    key = jax.random.PRNGKey(0)
    k_x, k_qkv, k_fc, k_bfc = jax.random.split(key, 4)

    x = jax.random.normal(k_x, (B, L, dim), dtype=jnp.float32)
    params = {
        # to_qkv: Linear(dim, 3*dim, bias=False), stored (in, out) so kernel does x @ W
        "w_qkv": 0.02 * jax.random.normal(k_qkv, (dim, 3 * dim), dtype=jnp.float32),
        # fc: Linear(dim, dim, bias=True)
        "w_fc": 0.02 * jax.random.normal(k_fc, (dim, dim), dtype=jnp.float32),
        "b_fc": 0.01 * jax.random.normal(k_bfc, (dim,), dtype=jnp.float32),
        # RMSNorm weights init to ones (matches nn.Parameter(torch.ones(head_dim)))
        "q_norm_w": jnp.ones((head_dim,), dtype=jnp.float32),
        "k_norm_w": jnp.ones((head_dim,), dtype=jnp.float32),
    }

    # tq=tk=8 -> grid (B, 2, 2): exercises multiple q tiles and multi-step online softmax.
    out = qk_norm_self_attention(x, params, head_dim, tq=8, tk=8)
    out = jax.block_until_ready(out)

    ref = reference_forward(x, params, head_dim)
    assert out.shape == (B, L, dim)
    # Kernel feeds the MXU bf16 operands (f32 accumulation), so compare against the
    # full-f32 reference with a bf16-mixed-precision tolerance.
    err = float(jnp.max(jnp.abs(out.astype(jnp.float32) - ref)))
    scl = float(jnp.max(jnp.abs(ref)))
    assert err <= 3e-2 * scl, f"mismatch vs reference: max|err|={err:.3e}, max|ref|={scl:.3e}"
    print("KERNEL_OK")
</pallas_src>

<mosaic_0001>
module attributes {stable_mosaic.version = 11 : i64} {
  func.func @_matmul_qknorm_kernel(%arg0: i32, %arg1: i32, %arg2: i32, %arg3: memref<32x128xbf16, #tpu.memory_space<vmem>>, %arg4: memref<128x384xbf16, #tpu.memory_space<vmem>>, %arg5: memref<1x384xf32, #tpu.memory_space<vmem>>, %arg6: memref<1x384xf32, #tpu.memory_space<vmem>>, %arg7: memref<384x12xf32, #tpu.memory_space<vmem>>, %arg8: memref<12x384xf32, #tpu.memory_space<vmem>>, %arg9: memref<32x384xbf16, #tpu.memory_space<vmem>>, %arg10: memref<32x384xf32, #tpu.memory_space<vmem>>) attributes {dimension_semantics = [#tpu.dimension_semantics<parallel>, #tpu.dimension_semantics<parallel>, #tpu.dimension_semantics<arbitrary>], iteration_bounds = array<i64: 1, 1, 1>, scalar_prefetch = 0 : i64, scratch_operands = 1 : i64, tpu.core_type = #tpu.core_type<tc>, window_params = [{transform_indices = @transform_0, window_bounds = array<i64: 32, 128>}, {transform_indices = @transform_1, window_bounds = array<i64: 128, 384>}, {transform_indices = @transform_2, window_bounds = array<i64: 1, 384>}, {transform_indices = @transform_3, window_bounds = array<i64: 1, 384>}, {pipeline_mode = #tpu.pipeline_mode<synchronous>, transform_indices = @transform_4, window_bounds = array<i64: 384, 12>}, {pipeline_mode = #tpu.pipeline_mode<synchronous>, transform_indices = @transform_5, window_bounds = array<i64: 12, 384>}, {transform_indices = @transform_6, window_bounds = array<i64: 32, 384>}]} {
    %c0_i32 = arith.constant 0 : i32
    %0 = arith.cmpi eq, %arg2, %c0_i32 : i32
    %1 = arith.extui %0 : i1 to i32
    %c0_i32_0 = arith.constant 0 : i32
    %2 = arith.cmpi ne, %1, %c0_i32_0 : i32
    scf.if %2 {
      %cst_10 = arith.constant 0.000000e+00 : f32
      %12 = vector.broadcast %cst_10 : f32 to vector<32x384xf32>
      %c0_11 = arith.constant 0 : index
      %c0_12 = arith.constant 0 : index
      %13 = vector.load %arg10[%c0_11, %c0_12] : memref<32x384xf32, #tpu.memory_space<vmem>>, vector<32x384xf32>
      tpu.vector_store %arg10[%c0_11, %c0_12], %12 {strides = array<i32>} : memref<32x384xf32, #tpu.memory_space<vmem>>, vector<32x384xf32>,
    } else {
    }
    %c0 = arith.constant 0 : index
    %c0_1 = arith.constant 0 : index
    %3 = vector.load %arg10[%c0, %c0_1] : memref<32x384xf32, #tpu.memory_space<vmem>>, vector<32x384xf32>
    %c0_2 = arith.constant 0 : index
    %c0_3 = arith.constant 0 : index
    %4 = vector.load %arg3[%c0_2, %c0_3] : memref<32x128xbf16, #tpu.memory_space<vmem>>, vector<32x128xbf16>
    %c0_4 = arith.constant 0 : index
    %c0_5 = arith.constant 0 : index
    %5 = vector.load %arg4[%c0_4, %c0_5] : memref<128x384xbf16, #tpu.memory_space<vmem>>, vector<128x384xbf16>
    %cst = arith.constant dense<0.000000e+00> : vector<32x384xf32>
    %6 = tpu.matmul %4, %5, %cst {dimension_numbers = #tpu.dot_dimension_numbers<[1], [0], [0], [1], [0, 0, 1, 1], [], []>} : vector<32x128xbf16>, vector<128x384xbf16>, vector<32x384xf32> -> vector<32x384xf32>
    %7 = arith.addf %3, %6 : vector<32x384xf32>
    %c0_6 = arith.constant 0 : index
    %c0_7 = arith.constant 0 : index
    %8 = vector.load %arg10[%c0_6, %c0_7] : memref<32x384xf32, #tpu.memory_space<vmem>>, vector<32x384xf32>
    tpu.vector_store %arg10[%c0_6, %c0_7], %7 {strides = array<i32>} : memref<32x384xf32, #tpu.memory_space<vmem>>, vector<32x384xf32>,
    %c0_i32_8 = arith.constant 0 : i32
    %9 = arith.cmpi eq, %arg2, %c0_i32_8 : i32
    %10 = arith.extui %9 : i1 to i32
    %c0_i32_9 = arith.constant 0 : i32
    %11 = arith.cmpi ne, %10, %c0_i32_9 : i32
    scf.if %11 {
      %c0_10 = arith.constant 0 : index
      %c0_11 = arith.constant 0 : index
      %12 = vector.load %arg10[%c0_10, %c0_11] : memref<32x384xf32, #tpu.memory_space<vmem>>, vector<32x384xf32>
      %13 = arith.mulf %12, %12 : vector<32x384xf32>
      %c0_12 = arith.constant 0 : index
      %c0_13 = arith.constant 0 : index
      %14 = vector.load %arg7[%c0_12, %c0_13] : memref<384x12xf32, #tpu.memory_space<vmem>>, vector<384x12xf32>
      %cst_14 = arith.constant dense<0.000000e+00> : vector<32x12xf32>
      %15 = tpu.matmul %13, %14, %cst_14 {dimension_numbers = #tpu.dot_dimension_numbers<[1], [0], [0], [1], [0, 0, 1, 1], [], []>} : vector<32x384xf32>, vector<384x12xf32>, vector<32x12xf32> -> vector<32x12xf32>
      %cst_15 = arith.constant 9.99999974E-6 : f32
      %16 = vector.broadcast %cst_15 : f32 to vector<32x12xf32>
      %17 = arith.addf %15, %16 : vector<32x12xf32>
      %18 = math.rsqrt %17 : vector<32x12xf32>
      %c0_16 = arith.constant 0 : index
      %c0_17 = arith.constant 0 : index
      %19 = vector.load %arg8[%c0_16, %c0_17] : memref<12x384xf32, #tpu.memory_space<vmem>>, vector<12x384xf32>
      %cst_18 = arith.constant dense<0.000000e+00> : vector<32x384xf32>
      %20 = tpu.matmul %18, %19, %cst_18 {dimension_numbers = #tpu.dot_dimension_numbers<[1], [0], [0], [1], [0, 0, 1, 1], [], []>} : vector<32x12xf32>, vector<12x384xf32>, vector<32x384xf32> -> vector<32x384xf32>
      %c0_19 = arith.constant 0 : index
      %c0_20 = arith.constant 0 : index
      %21 = vector.load %arg5[%c0_19, %c0_20] : memref<1x384xf32, #tpu.memory_space<vmem>>, vector<1x384xf32>
      %22 = vector.broadcast %21 : vector<1x384xf32> to vector<32x384xf32>
      %23 = arith.mulf %20, %22 : vector<32x384xf32>
      %c0_21 = arith.constant 0 : index
      %c0_22 = arith.constant 0 : index
      %24 = vector.load %arg6[%c0_21, %c0_22] : memref<1x384xf32, #tpu.memory_space<vmem>>, vector<1x384xf32>
      %25 = vector.broadcast %24 : vector<1x384xf32> to vector<32x384xf32>
      %26 = arith.addf %23, %25 : vector<32x384xf32>
      %27 = arith.mulf %12, %26 : vector<32x384xf32>
      %28 = arith.truncf %27 : vector<32x384xf32> to vector<32x384xbf16>
      %c0_23 = arith.constant 0 : index
      %c0_24 = arith.constant 0 : index
      %29 = vector.load %arg9[%c0_23, %c0_24] : memref<32x384xbf16, #tpu.memory_space<vmem>>, vector<32x384xbf16>
      tpu.vector_store %arg9[%c0_23, %c0_24], %28 {strides = array<i32>} : memref<32x384xbf16, #tpu.memory_space<vmem>>, vector<32x384xbf16>,
    } else {
    }
    return
  }
  func.func @transform_0(%arg0: i32, %arg1: i32, %arg2: i32) -> (i32, i32) {
    %c0_i32 = arith.constant 0 : i32
    return %arg0, %arg2 : i32, i32
  }
  func.func @transform_1(%arg0: i32, %arg1: i32, %arg2: i32) -> (i32, i32) {
    %c0_i32 = arith.constant 0 : i32
    return %arg2, %arg1 : i32, i32
  }
  func.func @transform_2(%arg0: i32, %arg1: i32, %arg2: i32) -> (i32, i32) {
    %c0_i32 = arith.constant 0 : i32
    %c0_i32_0 = arith.constant 0 : i32
    return %c0_i32, %arg1 : i32, i32
  }
  func.func @transform_3(%arg0: i32, %arg1: i32, %arg2: i32) -> (i32, i32) {
    %c0_i32 = arith.constant 0 : i32
    %c0_i32_0 = arith.constant 0 : i32
    return %c0_i32, %arg1 : i32, i32
  }
  func.func @transform_4(%arg0: i32, %arg1: i32, %arg2: i32) -> (i32, i32) {
    %c0_i32 = arith.constant 0 : i32
    %c0_i32_0 = arith.constant 0 : i32
    %c0_i32_1 = arith.constant 0 : i32
    return %c0_i32, %c0_i32_0 : i32, i32
  }
  func.func @transform_5(%arg0: i32, %arg1: i32, %arg2: i32) -> (i32, i32) {
    %c0_i32 = arith.constant 0 : i32
    %c0_i32_0 = arith.constant 0 : i32
    %c0_i32_1 = arith.constant 0 : i32
    return %c0_i32, %c0_i32_0 : i32, i32
  }
  func.func @transform_6(%arg0: i32, %arg1: i32, %arg2: i32) -> (i32, i32) {
    %c0_i32 = arith.constant 0 : i32
    return %arg0, %arg1 : i32, i32
  }
}

</mosaic_0001>

<bundles_post_ra>
// kernel: tpu_custom_call.1
= control target key start
LH: loop header
LB: loop body
LE: loop exit
PB: predicated region body
PF: predicated region fallthrough
CT: control target
= control target key end

     0   :  { %s1395_s0 = inlined_call_operand.vmem [shape: bf16[32,128], index: 0, kind: input, shape index: {}]   ;;  %s1396_s1 = inlined_call_operand.vmem [shape: bf16[128,384], index: 1, kind: input, shape index: {}]   ;;  %s1397_s2 = inlined_call_operand.vmem [shape: f32[1,384], index: 2, kind: input, shape index: {}]   ;;  %s1398_s3 = inlined_call_operand.vmem [shape: f32[1,384], index: 3, kind: input, shape index: {}]   ;;  %s1399_s4 = inlined_call_operand.vmem [shape: f32[384,12], index: 4, kind: input, shape index: {}]   ;;  %s1400_s5 = inlined_call_operand.vmem [shape: f32[12,384], index: 5, kind: input, shape index: {}]   ;;  %s1401_s6 = inlined_call_operand.hbm [shape: bf16[32,384], index: 6, kind: output, shape index: {}]  }
   0x1   :  { %v807_v0 = vld [vmem:[%s1396_s1 + $0xa8] sm:$0xf]  ;;  %v856_v1 = vld [vmem:[%s1396_s1 + $0xb0] sm:$0xf0]  ;;  %v815_v2 = vld [vmem:[%s1396_s1 + $0xb0] sm:$0xf] }
   0x2   :  { %v808_v3 = vor.u32 %v856_v1, %v807_v0  ;;  %v857_v4 = vld [vmem:[%s1396_s1 + $0xb8] sm:$0xf0]  ;;  %v795_v5 = vld [vmem:[%s1396_s1 + $0x90] sm:$0xf]  ;;  %v855_v8 = vld [vmem:[%s1396_s1 + $0xac] sm:$0xf] }
   0x3   :  { %v853_v6 = vld [vmem:[%s1396_s1 + $0x98] sm:$0xf0]  ;;  %v816_v7 = vor.u32 %v857_v4, %v815_v2  ;;  %v809_v9 = vld [vmem:[%s1396_s1 + $0xb4] sm:$0xf0]  ;;  %v854_v13 = vld [vmem:[%s1396_s1 + $0xa0] sm:$0xf0] }
   0x4   :  { %v803_v10 = vld [vmem:[%s1396_s1 + $0x98] sm:$0xf]  ;;  %228 = vmatpush.bf16.msra.mxu0 %v808_v3  ;;  %v796_v11 = vor.u32 %v853_v6, %v795_v5  ;;  %v812_v12 = vor.u32 %v855_v8, %v809_v9  ;;  %v850_v16 = vld [vmem:[%s1396_s1 + $0x80] sm:$0xf0]  ;;  %v852_v17 = vld [vmem:[%s1396_s1 + $0x94] sm:$0xf] }
   0x5   :  { %v783_v14 = vld [vmem:[%s1396_s1 + $0x78] sm:$0xf]  ;;  %266 = vmatpush.bf16.msra.mxu2 %v816_v7  ;;  %v804_v15 = vor.u32 %v854_v13, %v803_v10  ;;  %v797_v18 = vld [vmem:[%s1396_s1 + $0x9c] sm:$0xf0]  ;;  %v851_v21 = vld [vmem:[%s1396_s1 + $0x88] sm:$0xf0] }
   0x6   :  { %247 = vmatpush.bf16.msra.mxu1 %v812_v12  ;;  %v800_v19 = vor.u32 %v852_v17, %v797_v18  ;;  %v791_v20 = vld [vmem:[%s1396_s1 + $0x80] sm:$0xf]  ;;  %v849_v22 = vld [vmem:[%s1396_s1 + $0x7c] sm:$0xf]  ;;  %v785_v23 = vld [vmem:[%s1396_s1 + $0x84] sm:$0xf0]  ;;  %v784_v24 = vor.u32 %v850_v16, %v783_v14 }
   0x7   :  { %v792_v25 = vor.u32 %v851_v21, %v791_v20  ;;  %v771_v26 = vld [vmem:[%s1396_s1 + $0x60] sm:$0xf]  ;;  %v847_v27 = vld [vmem:[%s1396_s1 + $0x68] sm:$0xf0]  ;;  %v788_v28 = vor.u32 %v849_v22, %v785_v23  ;;  %v779_v29 = vld [vmem:[%s1396_s1 + $0x68] sm:$0xf] }
   0x8   :  { %229 = vmatpush.bf16.msra.mxu0 %v796_v11  ;;  %v848_v30 = vld [vmem:[%s1396_s1 + $0x70] sm:$0xf0]  ;;  %v846_v31 = vld [vmem:[%s1396_s1 + $0x64] sm:$0xf]  ;;  %v773_v32 = vld [vmem:[%s1396_s1 + $0x6c] sm:$0xf0]  ;;  %v772_v33 = vor.u32 %v847_v27, %v771_v26 }
   0x9   :  { %267 = vmatpush.bf16.msra.mxu2 %v804_v15  ;;  %v780_v34 = vor.u32 %v848_v30, %v779_v29  ;;  %v759_v35 = vld [vmem:[%s1396_s1 + $0x48] sm:$0xf]  ;;  %v844_v36 = vld [vmem:[%s1396_s1 + $0x50] sm:$0xf0]  ;;  %v776_v37 = vor.u32 %v846_v31, %v773_v32  ;;  %v767_v38 = vld [vmem:[%s1396_s1 + $0x50] sm:$0xf] }
   0xa   :  { %248 = vmatpush.bf16.msra.mxu1 %v800_v19  ;;  %v845_v39 = vld [vmem:[%s1396_s1 + $0x58] sm:$0xf0]  ;;  %v843_v40 = vld [vmem:[%s1396_s1 + $0x4c] sm:$0xf]  ;;  %v761_v41 = vld [vmem:[%s1396_s1 + $0x54] sm:$0xf0]  ;;  %v760_v42 = vor.u32 %v844_v36, %v759_v35 }
   0xb   :  { %v768_v43 = vor.u32 %v845_v39, %v767_v38  ;;  %v747_v44 = vld [vmem:[%s1396_s1 + $0x30] sm:$0xf]  ;;  %v841_v45 = vld [vmem:[%s1396_s1 + $0x38] sm:$0xf0] }
   0xc   :  { %230 = vmatpush.bf16.msra.mxu0 %v784_v24 }
   0xd   :  { %268 = vmatpush.bf16.msra.mxu2 %v792_v25 }
   0xe   :  { %249 = vmatpush.bf16.msra.mxu1 %v788_v28 }
  0x10   :  { %231 = vmatpush.bf16.msra.mxu0 %v772_v33 }
  0x11   :  { %269 = vmatpush.bf16.msra.mxu2 %v780_v34 }
  0x12   :  { %11 = vsyncpa [#allocation4], 0  ;;  %250 = vmatpush.bf16.msra.mxu1 %v776_v37  ;;  %v764_v46 = vor.u32 %v843_v40, %v761_v41  ;;  %v755_v47 = vld [vmem:[%s1396_s1 + $0x38] sm:$0xf]  ;;  %v842_v48 = vld [vmem:[%s1396_s1 + $0x40] sm:$0xf0]  ;;  %v748_v51 = vor.u32 %v841_v45, %v747_v44 }
  0x13   :  { %v840_v49 = vld [vmem:[%s1396_s1 + $0x34] sm:$0xf]  ;;  %v749_v50 = vld [vmem:[%s1396_s1 + $0x3c] sm:$0xf0]  ;;  %v735_v52 = vld [vmem:[%s1396_s1 + $0x18] sm:$0xf]  ;;  %v756_v53 = vor.u32 %v842_v48, %v755_v47 }
  0x14   :  { %232 = vmatpush.bf16.msra.mxu0 %v760_v42  ;;  %v838_v54 = vld [vmem:[%s1396_s1 + $0x20] sm:$0xf0]  ;;  %v351_v55 = vld [vmem:[%s1399_s4 + $0x78] sm:$0xff]  ;;  %v350_v56 = vld [vmem:[%s1399_s4 + $0x70] sm:$0xff]  ;;  %v752_v57 = vor.u32 %v840_v49, %v749_v50  ;;  %vm530_vm0 = vcmask 1043456   ;;  %vm517_vm2 = vcmask 97280  }
  0x15   :  { %270 = vmatpush.bf16.msra.mxu2 %v768_v43  ;;  %v743_v58 = vld [vmem:[%s1396_s1 + $0x20] sm:$0xf]  ;;  %v839_v59 = vld [vmem:[%s1396_s1 + $0x28] sm:$0xf0]  ;;  %384 = vmatpush.msra.mxu3 %v351_v55  ;;  %v837_v60 = vld [vmem:[%s1396_s1 + $0x1c] sm:$0xf]  ;;  %v736_v63 = vor.u32 %v838_v54, %v735_v52 }
  0x16   :  { %251 = vmatpush.bf16.msra.mxu1 %v764_v46  ;;  %v737_v61 = vld [vmem:[%s1396_s1 + $0x24] sm:$0xf0]  ;;  %v744_v0 = vor.u32 %v839_v59, %v743_v58  ;;  %v723_v1 = vld [vmem:[%s1396_s1] sm:$0xf]  ;;  %v835_v2 = vld [vmem:[%s1396_s1 + $0x8] sm:$0xf0] }
  0x17   :  { %v349_v62 = vld [vmem:[%s1399_s4 + $0x68] sm:$0xff]  ;;  %385 = vmatpush.msra.mxu3 %v350_v56  ;;  %v348_v3 = vld [vmem:[%s1399_s4 + $0x60] sm:$0xff]  ;;  %v740_v4 = vor.u32 %v837_v60, %v737_v61  ;;  %v836_v6 = vld [vmem:[%s1396_s1 + $0x10] sm:$0xf0]  ;;  %v724_v10 = vor.u32 %v835_v2, %v723_v1  ;;  %s930_s11 = smov 192   ;;  %s931_s12 = smov 12  }
  0x18   :  { %233 = vmatpush.bf16.msra.mxu0 %v748_v51  ;;  %v731_v5 = vld [vmem:[%s1396_s1 + $0x8] sm:$0xf]  ;;  %v834_v7 = vld [vmem:[%s1396_s1 + $0x4] sm:$0xf]  ;;  %v725_v8 = vld [vmem:[%s1396_s1 + $0xc] sm:$0xf0] }
  0x19   :  { %271 = vmatpush.bf16.msra.mxu2 %v756_v53  ;;  %386 = vmatpush.msra.mxu3 %v349_v62  ;;  %v347_v9 = vld [vmem:[%s1399_s4 + $0x58] sm:$0xff]  ;;  %v732_v11 = vor.u32 %v836_v6, %v731_v5  ;;  %v346_v12 = vld [vmem:[%s1399_s4 + $0x50] sm:$0xff]  ;;  %v728_v13 = vor.u32 %v834_v7, %v725_v8  ;;  %v832_v15 = vld [vmem:[%s1395_s0] sm:$0xff]  ;;  %s701_s1 = sshll.u32 %s1401_s6, 4  ;;  %s702_s1 = int_to_ptr.hbm [resolvable:$true] %s701_s1 }
  0x1a   :  { %252 = vmatpush.bf16.msra.mxu1 %v752_v57  ;;  %v367_v14 = vld [vmem:[%s1399_s4 + $0xf8] sm:$0xff]  ;;  %v345_v16 = vld [vmem:[%s1399_s4 + $0x48] sm:$0xff]  ;;  %v366_v18 = vld [vmem:[%s1399_s4 + $0xf0] sm:$0xff] }
  0x1b   :  { %387 = vmatpush.msra.mxu3 %v348_v3  ;;  %v1141_v17 = vld [vmem:[%s1399_s4 + $0x178] sm:$0xff]  ;;  %v344_v19 = vld [vmem:[%s1399_s4 + $0x40] sm:$0xff]  ;;  %v365_v20 = vld [vmem:[%s1399_s4 + $0xe8] sm:$0xff] }
  0x1c   :  { %234 = vmatpush.bf16.msra.mxu0 %v736_v63  ;;  %v1156_v21 = vld [vmem:[%s1399_s4 + $0x170] sm:$0xff]  ;;  %v343_v22 = vld [vmem:[%s1399_s4 + $0x38] sm:$0xff]  ;;  %v364_v23 = vld [vmem:[%s1399_s4 + $0xe0] sm:$0xff] }
  0x1d   :  { %272 = vmatpush.bf16.msra.mxu2 %v744_v0  ;;  %388 = vmatpush.msra.mxu3 %v347_v9  ;;  %v1167_v24 = vld [vmem:[%s1399_s4 + $0x168] sm:$0xff]  ;;  %v342_v25 = vld [vmem:[%s1399_s4 + $0x30] sm:$0xff]  ;;  %v363_v26 = vld [vmem:[%s1399_s4 + $0xd8] sm:$0xff] }
  0x1e   :  { %253 = vmatpush.bf16.msra.mxu1 %v740_v4  ;;  %v1179_v27 = vld [vmem:[%s1399_s4 + $0x160] sm:$0xff]  ;;  %v341_v28 = vld [vmem:[%s1399_s4 + $0x28] sm:$0xff]  ;;  %v362_v29 = vld [vmem:[%s1399_s4 + $0xd0] sm:$0xff] }
  0x1f   :  { %389 = vmatpush.msra.mxu3 %v346_v12  ;;  %v1192_v30 = vld [vmem:[%s1399_s4 + $0x158] sm:$0xff]  ;;  %v340_v31 = vld [vmem:[%s1399_s4 + $0x20] sm:$0xff]  ;;  %v361_v32 = vld [vmem:[%s1399_s4 + $0xc8] sm:$0xff] }
  0x20   :  { %235 = vmatpush.bf16.msra.mxu0 %v724_v10  ;;  %v1205_v33 = vld [vmem:[%s1399_s4 + $0x150] sm:$0xff]  ;;  %v339_v34 = vld [vmem:[%s1399_s4 + $0x18] sm:$0xff]  ;;  %v360_v35 = vld [vmem:[%s1399_s4 + $0xc0] sm:$0xff] }
  0x21   :  { %273 = vmatpush.bf16.msra.mxu2 %v732_v11  ;;  %390 = vmatpush.msra.mxu3 %v345_v16  ;;  %v1218_v36 = vld [vmem:[%s1399_s4 + $0x148] sm:$0xff]  ;;  %v338_v37 = vld [vmem:[%s1399_s4 + $0x10] sm:$0xff]  ;;  %v359_v39 = vld [vmem:[%s1399_s4 + $0xb8] sm:$0xff] }
  0x22   :  { %254 = vmatpush.bf16.msra.mxu1 %v728_v13  ;;  %v833_v38 = vld [vmem:[%s1395_s0 + $0x8] sm:$0xff]  ;;  %v376_v40 = vld [vmem:[%s1399_s4 + $0x140] sm:$0xff]  ;;  %v358_v41 = vld [vmem:[%s1399_s4 + $0xb0] sm:$0xff] }
  0x23   :  { %236 = vmatmul.bf16.vlgmr.msra.gmra.mxu0 %v832_v15  ;;  %391 = vmatpush.msra.mxu3 %v344_v19  ;;  %v375_v42 = vld [vmem:[%s1399_s4 + $0x138] sm:$0xff]  ;;  %v357_v43 = vld [vmem:[%s1399_s4 + $0xa8] sm:$0xff]  ;;  %v374_v44 = vld [vmem:[%s1399_s4 + $0x130] sm:$0xff] }
  0x24   :  { %413 = vmatpush.msrb.mxu0 %v367_v14  ;;  %274 = vmatmul.bf16.vlgmr.msra.gmra.mxu2 %v832_v15  ;;  %v356_v45 = vld [vmem:[%s1399_s4 + $0xa0] sm:$0xff]  ;;  %v373_v46 = vld [vmem:[%s1399_s4 + $0x128] sm:$0xff]  ;;  %v355_v48 = vld [vmem:[%s1399_s4 + $0x98] sm:$0xff] }
  0x25   :  { %255 = vmatmul.bf16.vlgmr.msra.gmra.mxu1 %v832_v15  ;;  %392 = vmatpush.msra.mxu3 %v343_v22  ;;  %v337_v47 = vld [vmem:[%s1399_s4 + $0x8] sm:$0xff]  ;;  %v372_v49 = vld [vmem:[%s1399_s4 + $0x120] sm:$0xff]  ;;  %v354_v51 = vld [vmem:[%s1399_s4 + $0x90] sm:$0xff] }
  0x26   :  { %442 = vmatpush.msrb.mxu1 %v1141_v17  ;;  %414 = vmatpush.msrb.mxu0 %v366_v18  ;;  %v336_v50 = vld [vmem:[%s1399_s4] sm:$0xff]  ;;  %v371_v52 = vld [vmem:[%s1399_s4 + $0x118] sm:$0xff]  ;;  %v353_v53 = vld [vmem:[%s1399_s4 + $0x88] sm:$0xff] }
  0x27   :  { %858 = vmatpush.msrb.mxu2 %v1141_v17  ;;  %393 = vmatpush.msra.mxu3 %v342_v25  ;;  %v370_v54 = vld [vmem:[%s1399_s4 + $0x110] sm:$0xff]  ;;  %v352_v55 = vld [vmem:[%s1399_s4 + $0x80] sm:$0xff]  ;;  %v369_v56 = vld [vmem:[%s1399_s4 + $0x108] sm:$0xff] }
  0x28   :  { %415 = vmatpush.msrb.mxu0 %v365_v20  ;;  %443 = vmatpush.msrb.mxu1 %v1156_v21  ;;  %v368_v57 = vld [vmem:[%s1399_s4 + $0x100] sm:$0xff]  ;;  %v514_v18 = vld [vmem:[%s1400_s5 + $0x18] sm:$0xf]  ;;  %v516_v20 = vld [vmem:[%s1400_s5 + $0x28] sm:$0xf] }
  0x29   :  { %860 = vmatpush.msrb.mxu2 %v1156_v21  ;;  %394 = vmatpush.msra.mxu3 %v341_v28  ;;  %v515_v19 = vld [vmem:[%s1400_s5 + $0x20] sm:$0xf]  ;;  %v512_v22 = vld [vmem:[%s1400_s5 + $0x8] sm:$0xff] }
  0x2a   :  { %416 = vmatpush.msrb.mxu0 %v364_v23  ;;  %444 = vmatpush.msrb.mxu1 %v1167_v24  ;;  %v513_v23 = vld [vmem:[%s1400_s5 + $0x10] sm:$0xff] }
  0x2b   :  { %862 = vmatpush.msrb.mxu2 %v1167_v24  ;;  %395 = vmatpush.msra.mxu3 %v340_v31 }
  0x2c   :  { %417 = vmatpush.msrb.mxu0 %v363_v26  ;;  %445 = vmatpush.msrb.mxu1 %v1179_v27 }
  0x2d   :  { %864 = vmatpush.msrb.mxu2 %v1179_v27  ;;  %396 = vmatpush.msra.mxu3 %v339_v34 }
  0x2e   :  { %418 = vmatpush.msrb.mxu0 %v362_v29  ;;  %446 = vmatpush.msrb.mxu1 %v1192_v30 }
  0x2f   :  { %866 = vmatpush.msrb.mxu2 %v1192_v30  ;;  %397 = vmatpush.msra.mxu3 %v338_v37 }
  0x30   :  { %419 = vmatpush.msrb.mxu0 %v361_v32  ;;  %447 = vmatpush.msrb.mxu1 %v1205_v33 }
  0x31   :  { %868 = vmatpush.msrb.mxu2 %v1205_v33  ;;  %398 = vmatpush.msra.mxu3 %v337_v47 }
  0x32   :  { %420 = vmatpush.msrb.mxu0 %v360_v35  ;;  %448 = vmatpush.msrb.mxu1 %v1218_v36 }
  0x33   :  { %241 = vmatmul.bf16.gmra.mxu0 %v833_v38  ;;  %870 = vmatpush.msrb.mxu2 %v1218_v36 }
  0x34   :  { %421 = vmatpush.msrb.mxu0 %v359_v39  ;;  %449 = vmatpush.msrb.mxu1 %v376_v40 }
  0x35   :  { %279 = vmatmul.bf16.gmra.mxu2 %v833_v38  ;;  %260 = vmatmul.bf16.gmra.mxu1 %v833_v38 }
  0x36   :  { %422 = vmatpush.msrb.mxu0 %v358_v41  ;;  %872 = vmatpush.msrb.mxu2 %v376_v40 }
  0x37   :  { %450 = vmatpush.msrb.mxu1 %v375_v42  ;;  %399 = vmatpush.msra.mxu3 %v336_v50 }
  0x38   :  { %423 = vmatpush.msrb.mxu0 %v357_v43  ;;  %874 = vmatpush.msrb.mxu2 %v375_v42 }
  0x39   :  { %451 = vmatpush.msrb.mxu1 %v374_v44  ;;  %859 = vmatpush.msrb.mxu3 %v1141_v17 }
  0x3a   :  { %424 = vmatpush.msrb.mxu0 %v356_v45  ;;  %876 = vmatpush.msrb.mxu2 %v374_v44 }
  0x3b   :  { %452 = vmatpush.msrb.mxu1 %v373_v46  ;;  %861 = vmatpush.msrb.mxu3 %v1156_v21  ;;  %v511_v21 = vld [vmem:[%s1400_s5] sm:$0xff] }
  0x3c   :  { %878 = vmatpush.msrb.mxu2 %v373_v46  ;;  %425 = vmatpush.msrb.mxu0 %v355_v48 }
  0x3d   :  { %453 = vmatpush.msrb.mxu1 %v372_v49  ;;  %863 = vmatpush.msrb.mxu3 %v1167_v24 }
  0x3e   :  { %880 = vmatpush.msrb.mxu2 %v372_v49  ;;  %426 = vmatpush.msrb.mxu0 %v354_v51 }
  0x3f   :  { %454 = vmatpush.msrb.mxu1 %v371_v52  ;;  %865 = vmatpush.msrb.mxu3 %v1179_v27 }
  0x40   :  { %427 = vmatpush.msrb.mxu0 %v353_v53  ;;  %882 = vmatpush.msrb.mxu2 %v371_v52 }
  0x41   :  { %455 = vmatpush.msrb.mxu1 %v370_v54  ;;  %867 = vmatpush.msrb.mxu3 %v1192_v30 }
  0x42   :  { %428 = vmatpush.msrb.mxu0 %v352_v55  ;;  %884 = vmatpush.msrb.mxu2 %v370_v54 }
  0x43   :  { %456 = vmatpush.msrb.mxu1 %v369_v56  ;;  %869 = vmatpush.msrb.mxu3 %v1205_v33 }
  0x44   :  { %886 = vmatpush.msrb.mxu2 %v369_v56  ;;  %827 = vmatpush.msk.msra.mxu0 %vm530_vm0, %v516_v20 }
  0x45   :  { %457 = vmatpush.msrb.mxu1 %v368_v57  ;;  %871 = vmatpush.msrb.mxu3 %v1218_v36 }
  0x46   :  { %888 = vmatpush.msrb.mxu2 %v368_v57  ;;  %613 = vmatpush.msra.mxu0 %v513_v23 }
  0x47   :  { %873 = vmatpush.msrb.mxu3 %v376_v40  ;;  %890 = vmatpush.msk.msra.mxu1 %vm530_vm0, %v516_v20 }
  0x48   :  { %817 = vmatpush.msk.msra.mxu2 %vm530_vm0, %v514_v18 }
  0x49   :  { %875 = vmatpush.msrb.mxu3 %v375_v42  ;;  %891 = vmatpush.msra.mxu1 %v513_v23 }
  0x4a   :  { %555 = vmatpush.msra.mxu2 %v511_v21 }
  0x4b   :  { %877 = vmatpush.msrb.mxu3 %v374_v44 }
  0x4d   :  { %879 = vmatpush.msrb.mxu3 %v373_v46 }
  0x4f   :  { %881 = vmatpush.msrb.mxu3 %v372_v49 }
  0x51   :  { %883 = vmatpush.msrb.mxu3 %v371_v52 }
  0x53   :  { %885 = vmatpush.msrb.mxu3 %v370_v54 }
  0x55   :  { %887 = vmatpush.msrb.mxu3 %v369_v56 }
  0x57   :  { %889 = vmatpush.msrb.mxu3 %v368_v57 }
  0xa0   :  { %v1296_v58 = vpop.f32.mrf.mxu0 }
  0xa1   :  { %v324_v59 = vmul.f32 %v1296_v58, %v1296_v58 }
  0xa2   :  { %v1300_v60 = vpop.f32.mrf.mxu1 }
  0xa3   :  { %400 = vmatmul.f32.vlgmr.msra.gmra.mxu3 %v324_v59  ;;  %v325_v61 = vmul.f32 %v1300_v60, %v1300_v60 }
  0xa4   :  { %822 = vmatpush.msk.msra.mxu3 %vm530_vm0, %v515_v19 }
  0xa5   :  { %429 = vmatmul.f32.vlgmr.msrb.gmra.mxu0 %v325_v61 }
  0xa6   :  { %584 = vmatpush.msra.mxu3 %v512_v22 }
  0xa7   :  { %v1304_v62 = vpop.f32.mrf.mxu2 }
  0xa8   :  { %v326_v63 = vmul.f32 %v1304_v62, %v1304_v62  ;;  %v1308_v0 = vpop.f32.mrf.mxu0 }
  0xa9   :  { %v327_v1 = vmul.f32 %v1308_v0, %v1308_v0 }
  0xaa   :  { %458 = vmatmul.f32.vlgmr.msrb.gmra.mxu1 %v326_v63  ;;  %v1312_v2 = vpop.f32.mrf.mxu1 }
  0xab   :  { %403 = vmatmul.f32.gmra.mxu3 %v327_v1  ;;  %v328_v3 = vmul.f32 %v1312_v2, %v1312_v2 }
  0xad   :  { %432 = vmatmul.f32.gmra.mxu0 %v328_v3 }
  0xaf   :  { %v1316_v4 = vpop.f32.mrf.mxu2 }
  0xb0   :  { %v1318_v5 = vpop.f32.mrf.mxu0  ;;  %v329_v6 = vmul.f32 %v1316_v4, %v1316_v4 }
  0xb1   :  { %v330_v7 = vmul.f32 %v1318_v5, %v1318_v5 }
  0xb2   :  { %461 = vmatmul.f32.gmra.mxu1 %v329_v6  ;;  %v1324_v8 = vpop.f32.mrf.mxu1 }
  0xb3   :  { %406 = vmatmul.f32.gmra.mxu3 %v330_v7  ;;  %v331_v9 = vmul.f32 %v1324_v8, %v1324_v8 }
  0xb5   :  { %435 = vmatmul.f32.gmra.mxu0 %v331_v9 }
  0xb8   :  { %v1328_v10 = vpop.f32.mrf.mxu2  ;;  %v1332_v12 = vpop.f32.mrf.mxu0 }
  0xb9   :  { %v332_v11 = vmul.f32 %v1328_v10, %v1328_v10  ;;  %v333_v13 = vmul.f32 %v1332_v12, %v1332_v12 }
  0xba   :  { %v1336_v14 = vpop.f32.mrf.mxu1 }
  0xbb   :  { %464 = vmatmul.f32.vlgmr.msrb.gmra.mxu2 %v332_v11  ;;  %409 = vmatmul.f32.gmra.mxu3 %v333_v13  ;;  %v334_v15 = vmul.f32 %v1336_v14, %v1336_v14 }
  0xbd   :  { %438 = vmatmul.f32.gmra.mxu0 %v334_v15 }
  0xc0   :  { %v1340_v16 = vpop.f32.mrf.mxu2 }
  0xc1   :  { %v335_v17 = vmul.f32 %v1340_v16, %v1340_v16 }
  0xc3   :  { %467 = vmatmul.f32.vlgmr.msrb.gmra.mxu3 %v335_v17 }
 0x122   :  { %v430_v24 = vpop.f32.mrf.mxu0 }
 0x126   :  { %v401_v25 = vpop.f32.mrf.mxu3 }
 0x127   :  { %v402_v26 = vadd.f32 1e-05, %v401_v25  ;;  %v459_v27 = vpop.f32.mrf.mxu1  ;;  %v647_v25 = vld [vmem:[%s1398_s3] sm:$0x7] }
 0x129   :  { %v431_v28 = vadd.f32 %v430_v24, %v402_v26  ;;  %v627_v24 = vld [vmem:[%s1397_s2] sm:$0x7]  ;;  %s929_s2 = smov [#allocation3]  }
 0x12a   :  { %v433_v32 = vpop.f32.mrf.mxu0  ;;  %v631_v26 = vperm.slane %v627_v24, 2  ;;  %s699_s3 = sshll.u32 %s929_s2, 4  ;;  %s700_s3 = int_to_ptr.vmem [resolvable:$true] %s699_s3 }
 0x12b   :  { %v460_v29 = vadd.f32 %v459_v27, %v431_v28  ;;  %v651_v27 = vperm.slane %v647_v25, 2 }
 0x12d   :  { %895 = vrsqrt.f32 %v460_v29  ;;  %vm477_vm3 = vweird.f32 %v460_v29 }
 0x12e   :  { %v404_v30 = vpop.f32.mrf.mxu3 }
 0x12f   :  { %v405_v31 = vadd.f32 1e-05, %v404_v30  ;;  %v462_v34 = vpop.f32.mrf.mxu1  ;;  %v629_v30 = vperm.slane %v627_v24, 0 }
 0x131   :  { %v434_v33 = vadd.f32 %v433_v32, %v405_v31  ;;  %v630_v31 = vperm.slane %v627_v24, 1 }
 0x132   :  { %v436_v43 = vpop.f32.mrf.mxu0 }
 0x133   :  { %v896_v35 = vpop.eup %895  ;;  %v463_v36 = vadd.f32 %v462_v34, %v434_v33  ;;  %v649_v33 = vperm.slane %v647_v25, 0  ;;  %v650_v34 = vperm.slane %v647_v25, 1 }
 0x134   :  { %v472_v37 = vmul.f32 %v896_v35, %v460_v29  ;;  %vm478_vm1 = vweird.f32 %v896_v35 }
 0x135   :  { %897 = vrsqrt.f32 %v463_v36  ;;  %vm479_vm4 = vmor %vm477_vm3, %vm478_vm1  ;;  %vm487_vm6 = vweird.f32 %v463_v36 }
 0x136   :  { %v473_v38 = vmul.f32 %v896_v35, %v472_v37  ;;  %v407_v39 = vpop.f32.mrf.mxu3 }
 0x137   :  { %v408_v41 = vadd.f32 1e-05, %v407_v39 }
 0x138   :  { %v474_v40 = vmul.f32 0.5, %v473_v38 }
 0x139   :  { %v437_v47 = vadd.f32 %v436_v43, %v408_v41 }
 0x13a   :  { %v475_v42 = vsub.f32 1.5, %v474_v40  ;;  %v439_v56 = vpop.f32.mrf.mxu0 }
 0x13b   :  { %v898_v44 = vpop.eup %897 }
 0x13c   :  { %v476_v45 = vmul.f32 %v896_v35, %v475_v42  ;;  %v482_v46 = vmul.f32 %v898_v44, %v463_v36  ;;  %vm488_vm5 = vweird.f32 %v898_v44 }
 0x13d   :  { %vm489_vm7 = vmor %vm487_vm6, %vm488_vm5 }
 0x13e   :  { %v465_v48 = vpop.f32.mrf.mxu2  ;;  %v483_v49 = vmul.f32 %v898_v44, %v482_v46  ;;  %v410_v51 = vpop.f32.mrf.mxu3  ;;  %v480_v52 = vsel %vm479_vm4, %v896_v35, %v476_v45 }
 0x13f   :  { %v466_v50 = vadd.f32 %v465_v48, %v437_v47  ;;  %818 = vmatmul.msk.f32.vlgmr.msra.gmra.mxu2 %vm517_vm2, %v480_v52  ;;  %823 = vmatmul.msk.f32.vlgmr.msra.gmra.mxu3 %vm517_vm2, %v480_v52  ;;  %v411_v54 = vadd.f32 1e-05, %v410_v51 }
 0x140   :  { %v484_v53 = vmul.f32 0.5, %v483_v49  ;;  %828 = vmatmul.msk.f32.vlgmr.msra.gmra.mxu0 %vm517_vm2, %v480_v52 }
 0x141   :  { %899 = vrsqrt.f32 %v466_v50  ;;  %v440_v59 = vadd.f32 %v439_v56, %v411_v54  ;;  %vm497_vm9 = vweird.f32 %v466_v50 }
 0x142   :  { %v485_v55 = vsub.f32 1.5, %v484_v53 }
 0x144   :  { %v486_v57 = vmul.f32 %v898_v44, %v485_v55 }
 0x146   :  { %v468_v63 = vpop.f32.mrf.mxu3  ;;  %v490_v1 = vsel %vm489_vm7, %v898_v44, %v486_v57 }
 0x147   :  { %v900_v61 = vpop.eup %899  ;;  %v469_v6 = vadd.f32 %v468_v63, %v440_v59  ;;  %819 = vmatmul.msk.f32.gmra.mxu2 %vm517_vm2, %v490_v1  ;;  %824 = vmatmul.msk.f32.gmra.mxu3 %vm517_vm2, %v490_v1 }
 0x148   :  { %v492_v3 = vmul.f32 %v900_v61, %v466_v50  ;;  %829 = vmatmul.msk.f32.vlgmr.msra.gmra.mxu1 %vm517_vm2, %v490_v1  ;;  %vm498_vm8 = vweird.f32 %v900_v61 }
 0x149   :  { %901 = vrsqrt.f32 %v469_v6  ;;  %vm499_vm10 = vmor %vm497_vm9, %vm498_vm8  ;;  %vm507_vm12 = vweird.f32 %v469_v6 }
 0x14a   :  { %v493_v7 = vmul.f32 %v900_v61, %v492_v3 }
 0x14c   :  { %v494_v9 = vmul.f32 0.5, %v493_v7 }
 0x14e   :  { %v495_v11 = vsub.f32 1.5, %v494_v9 }
 0x14f   :  { %v902_v13 = vpop.eup %901 }
 0x150   :  { %v496_v15 = vmul.f32 %v900_v61, %v495_v11  ;;  %v502_v17 = vmul.f32 %v902_v13, %v469_v6  ;;  %vm508_vm11 = vweird.f32 %v902_v13 }
 0x151   :  { %vm509_vm13 = vmor %vm507_vm12, %vm508_vm11 }
 0x152   :  { %v500_v18 = vsel %vm499_vm10, %v900_v61, %v496_v15  ;;  %v503_v19 = vmul.f32 %v902_v13, %v502_v17 }
 0x153   :  { %820 = vmatmul.msk.f32.gmra.mxu2 %vm517_vm2, %v500_v18  ;;  %825 = vmatmul.msk.f32.gmra.mxu3 %vm517_vm2, %v500_v18 }
 0x154   :  { %830 = vmatmul.msk.f32.gmra.mxu1 %vm517_vm2, %v500_v18  ;;  %v504_v20 = vmul.f32 0.5, %v503_v19 }
 0x156   :  { %v505_v21 = vsub.f32 1.5, %v504_v20 }
 0x158   :  { %v506_v22 = vmul.f32 %v902_v13, %v505_v21 }
 0x15a   :  { %v510_v23 = vsel %vm509_vm13, %v902_v13, %v506_v22 }
 0x15b   :  { %821 = vmatmul.msk.f32.gmra.mxu2 %vm517_vm2, %v510_v23  ;;  %826 = vmatmul.msk.f32.gmra.mxu3 %vm517_vm2, %v510_v23 }
 0x15c   :  { %831 = vmatmul.msk.f32.gmra.mxu1 %vm517_vm2, %v510_v23 }
 0x1bd   :  { %v615_v28 = vpop.f32.mrf.mxu0 }
 0x1be   :  { %v637_v29 = vmul.f32 %v631_v26, %v615_v28 }
 0x1c0   :  { %v657_v32 = vadd.f32 %v651_v27, %v637_v29 }
 0x1c2   :  { %v669_v35 = vmul.f32 %v657_v32, %v1304_v62  ;;  %v557_v36 = vpop.f32.mrf.mxu2  ;;  %v586_v37 = vpop.f32.mrf.mxu3 }
 0x1c3   :  { %v635_v38 = vmul.f32 %v629_v30, %v557_v36  ;;  %v636_v39 = vmul.f32 %v630_v31, %v586_v37 }
 0x1c4   :  { %v680_v40 = vpack.c.bf16 %v669_v35, %v669_v35 }
 0x1c5   :  { %v655_v41 = vadd.f32 %v649_v33, %v635_v38  ;;  %v656_v42 = vadd.f32 %v650_v34, %v636_v39  ;;  %v618_v43 = vpop.f32.mrf.mxu1 }
 0x1c6   :  { %688 = vst [vmem:[#allocation3 + $0x8] sm:$0xf] %v680_v40  ;;  %v640_v44 = vmul.f32 %v631_v26, %v618_v43 }
 0x1c7   :  { %v667_v45 = vmul.f32 %v655_v41, %v1296_v58  ;;  %v668_v46 = vmul.f32 %v656_v42, %v1300_v60 }
 0x1c8   :  { %v660_v47 = vadd.f32 %v651_v27, %v640_v44 }
 0x1c9   :  { %v679_v48 = vpack.c.bf16 %v668_v46, %v667_v45 }
 0x1ca   :  { %v672_v49 = vmul.f32 %v660_v47, %v1316_v4  ;;  %v560_v50 = vpop.f32.mrf.mxu2  ;;  %v589_v62 = vpop.f32.mrf.mxu3 }
 0x1cb   :  { %687 = vst [vmem:[#allocation3] sm:$0xff] %v679_v48  ;;  %v638_v51 = vmul.f32 %v629_v30, %v560_v50  ;;  %v639_v52 = vmul.f32 %v630_v31, %v589_v62 }
 0x1cc   :  { %v682_v53 = vpack.c.bf16 %v672_v49, %v672_v49 }
 0x1cd   :  { %v658_v54 = vadd.f32 %v649_v33, %v638_v51  ;;  %v659_v55 = vadd.f32 %v650_v34, %v639_v52 }
 0x1ce   :  { %690 = vst [vmem:[#allocation3 + $0x14] sm:$0xf] %v682_v53 }
 0x1cf   :  { %v670_v56 = vmul.f32 %v658_v54, %v1308_v0  ;;  %v671_v57 = vmul.f32 %v659_v55, %v1312_v2 }
 0x1d1   :  { %v621_v58 = vpop.f32.mrf.mxu1  ;;  %v681_v59 = vpack.c.bf16 %v671_v57, %v670_v56 }
 0x1d2   :  { %v643_v60 = vmul.f32 %v631_v26, %v621_v58 }
 0x1d3   :  { %689 = vst [vmem:[#allocation3 + $0xc] sm:$0xff] %v681_v59 }
 0x1d4   :  { %v663_v61 = vadd.f32 %v651_v27, %v643_v60 }
 0x1d6   :  { %v675_v4 = vmul.f32 %v663_v61, %v1328_v10  ;;  %v563_v63 = vpop.f32.mrf.mxu2  ;;  %v592_v1 = vpop.f32.mrf.mxu3 }
 0x1d7   :  { %v641_v3 = vmul.f32 %v629_v30, %v563_v63  ;;  %v642_v6 = vmul.f32 %v630_v31, %v592_v1 }
 0x1d8   :  { %v684_v7 = vpack.c.bf16 %v675_v4, %v675_v4 }
 0x1d9   :  { %v661_v9 = vadd.f32 %v649_v33, %v641_v3  ;;  %v662_v11 = vadd.f32 %v650_v34, %v642_v6  ;;  %v624_v13 = vpop.f32.mrf.mxu1 }
 0x1da   :  { %692 = vst [vmem:[#allocation3 + $0x20] sm:$0xf] %v684_v7  ;;  %v646_v15 = vmul.f32 %v631_v26, %v624_v13 }
 0x1db   :  { %v673_v0 = vmul.f32 %v661_v9, %v1318_v5  ;;  %v674_v2 = vmul.f32 %v662_v11, %v1324_v8 }
 0x1dc   :  { %v666_v18 = vadd.f32 %v651_v27, %v646_v15 }
 0x1dd   :  { %v683_v17 = vpack.c.bf16 %v674_v2, %v673_v0 }
 0x1de   :  { %v678_v19 = vmul.f32 %v666_v18, %v1340_v16  ;;  %v566_v10 = vpop.f32.mrf.mxu2  ;;  %v595_v20 = vpop.f32.mrf.mxu3 }
 0x1df   :  { %691 = vst [vmem:[#allocation3 + $0x18] sm:$0xff] %v683_v17  ;;  %v644_v21 = vmul.f32 %v629_v30, %v566_v10  ;;  %v645_v22 = vmul.f32 %v630_v31, %v595_v20 }
 0x1e0   :  { %v686_v23 = vpack.c.bf16 %v678_v19, %v678_v19 }
 0x1e1   :  { %v664_v24 = vadd.f32 %v649_v33, %v644_v21  ;;  %v665_v25 = vadd.f32 %v650_v34, %v645_v22 }
 0x1e2   :  { %694 = vst [vmem:[#allocation3 + $0x2c] sm:$0xf] %v686_v23 }
 0x1e3   :  { %v676_v5 = vmul.f32 %v664_v24, %v1332_v12  ;;  %v677_v8 = vmul.f32 %v665_v25, %v1336_v14 }
 0x1e5   :  { %v685_v16 = vpack.c.bf16 %v677_v8, %v676_v5 }
 0x1e7   :  { %693 = vst [vmem:[#allocation3 + $0x24] sm:$0xff] %v685_v16 }
 0x1e8   :  { %707 = dma.vmem_to_hbm [thread:$0]  %s700_s3, 768, %s702_s1, [#allocation4], %s930_s11, %s930_s11, %s931_s12  }
 0x1e9   :  { %927 = dma.done.wait [#allocation4], 768  }
 0x1ea   :  { %928 = vsyncadd [#allocation4], 4294966528 }
 0x1eb   :  { %712 = vsyncpa [#allocation4], 1 }

</bundles_post_ra>
